<compile_context>
chip_gen: v7x
topology: tpu7x:2x2x1
jax: 0.10.0
libtpu: 0.0.40
codegen_flags: <defaults>
</compile_context>

<pallas_src>
import functools

import numpy as np
import jax
import jax.numpy as jnp
from jax import lax
from jax.experimental import pallas as pl
from jax.experimental.pallas import tpu as pltpu


def _round_up(n, m):
    return (n + m - 1) // m * m


def _choose_bblk(batch, hw, max_lanes=8192):
    """Images per grid step.

    Amortize per-step overhead (bigger lane blocks) while keeping >=2 grid
    steps when B >= 2 so v7x can shard the batch axis over its 2 TensorCores,
    and keeping the lane block either 128-divisible or the full array extent.
    max_lanes keeps the f32 patch tensors (2 x 72 x lanes x 4B) far below the
    v7x 64 MiB VMEM / 32 MiB default scoped limit.
    """
    candidates = []
    for cand in range(1, batch + 1):
        if batch % cand:
            continue
        if cand != batch and (cand * hw) % 128 != 0:
            continue                      # sub-array lane blocks must be lane-aligned
        if batch >= 2 and batch // cand < 2:
            continue                      # keep >=2 steps for v7x's two TCs
        candidates.append(cand)
    fitting = [c for c in candidates if c * hw <= max_lanes]
    if fitting:
        return max(fitting)
    return min(candidates) if candidates else batch


def double_conv_kernel(mask_ref, x_ref, w1_ref, b1_ref, w2_ref, b2_ref, o_ref,
                       *, W, n_lanes):
    """One grid step: Bblk images, all channels, fully fused in VMEM.

    mask_ref: (8, n_lanes) f32 0/1 — per non-center tap validity (dest pixel).
    x_ref:    (Cin_p, n_lanes) f32.
    w*_ref:   (Cout_p, 9*Cin_p) f32, column order (dy*3+dx)*Cin_p + ci.
    b*_ref:   (Cout_p, 1) f32.
    o_ref:    (Cout_p, n_lanes) f32.
    """

    def conv3x3(a, w_ref, b_ref):
        taps = []
        m = 0
        for dy in range(3):
            for dx in range(3):
                if dy == 1 and dx == 1:
                    taps.append(a)                       # center: no shift/mask
                else:
                    d = (dy - 1) * W + (dx - 1)
                    # result[:, p] = a[:, (p + d) % n_lanes]  (np.roll semantics)
                    shifted = pltpu.roll(a, shift=(-d) % n_lanes, axis=1)
                    taps.append(shifted * mask_ref[m:m + 1, :])
                    m += 1
        # 9 sublane-tile-aligned (C_p, n_lanes) taps -> (9*C_p, n_lanes)
        patches = jnp.concatenate(taps, axis=0)
        acc = jnp.dot(w_ref[...], patches,
                      preferred_element_type=jnp.float32)
        return acc + b_ref[...]

    x = x_ref[...]                                        # (Cin_p, n_lanes) f32
    h = jnp.maximum(conv3x3(x, w1_ref, b1_ref), 0.0)      # conv1 + ReLU
    o_ref[...] = jnp.tanh(conv3x3(h, w2_ref, b2_ref)).astype(o_ref.dtype)


@jax.jit
def double_conv(x_nchw, w1, b1, w2, b2):
    """x_nchw: (B, Cin, H, W) f32; w*: (3, 3, Ci, Co) HWIO. Returns (B, Cout, H, W) f32."""
    B, Cin, H, W = x_nchw.shape
    Cout = w1.shape[-1]
    HW = H * W

    Cin_p = _round_up(Cin, 8)         # f32 sublane tile
    Cout_p = _round_up(Cout, 8)
    Bblk = _choose_bblk(B, HW)
    n_lanes = Bblk * HW
    assert (n_lanes % 128 == 0) or (Bblk == B)

    # ---- data layout: (B, Cin, H, W) -> (Cin_p, B*HW), channels sublane-padded.
    x_l = jnp.transpose(x_nchw, (1, 0, 2, 3)).reshape(Cin, B * HW)
    x_l = jnp.pad(x_l, ((0, Cin_p - Cin), (0, 0))).astype(jnp.float32)

    # ---- weights: HWIO (3,3,Ci,Co) zero-padded to (3,3,Ci_p,Co_p),
    #      then (Co_p, 9*Ci_p); column index = (dy*3+dx)*Ci_p + ci (kernel order).
    def pack_w(w, ci, ci_p, co, co_p):
        w = jnp.pad(w, ((0, 0), (0, 0), (0, ci_p - ci), (0, co_p - co)))
        return jnp.transpose(w.reshape(9 * ci_p, co_p)).astype(jnp.float32)

    w1_2d = pack_w(w1, Cin, Cin_p, Cout, Cout_p)
    w2_2d = pack_w(w2, Cout, Cout_p, Cout, Cout_p)
    b1_col = jnp.pad(b1, (0, Cout_p - Cout)).reshape(Cout_p, 1).astype(jnp.float32)
    b2_col = jnp.pad(b2, (0, Cout_p - Cout)).reshape(Cout_p, 1).astype(jnp.float32)

    # ---- hoisted border masks: one row per non-center tap, tiled Bblk times.
    yy, xx = np.meshgrid(np.arange(H), np.arange(W), indexing="ij")
    rows = []
    for dy in range(3):
        for dx in range(3):
            if dy == 1 and dx == 1:
                continue
            ys, xs = yy + dy - 1, xx + dx - 1
            valid = (ys >= 0) & (ys < H) & (xs >= 0) & (xs < W)
            rows.append(np.tile(valid.reshape(-1), Bblk))
    mask = jnp.asarray(np.stack(rows).astype(np.float32))  # (8, n_lanes)

    kernel = functools.partial(double_conv_kernel, W=W, n_lanes=n_lanes)
    out = pl.pallas_call(
        kernel,
        out_shape=jax.ShapeDtypeStruct((Cout_p, B * HW), jnp.float32),
        grid_spec=pltpu.PrefetchScalarGridSpec(
            num_scalar_prefetch=0,
            grid=(B // Bblk,),
            in_specs=[
                pl.BlockSpec((8, n_lanes), lambda b: (0, 0)),           # masks (resident)
                pl.BlockSpec((Cin_p, n_lanes), lambda b: (0, b)),       # x lane-block
                pl.BlockSpec((Cout_p, 9 * Cin_p), lambda b: (0, 0)),    # w1 (resident)
                pl.BlockSpec((Cout_p, 1), lambda b: (0, 0)),            # b1
                pl.BlockSpec((Cout_p, 9 * Cout_p), lambda b: (0, 0)),   # w2 (resident)
                pl.BlockSpec((Cout_p, 1), lambda b: (0, 0)),            # b2
            ],
            out_specs=pl.BlockSpec((Cout_p, n_lanes), lambda b: (0, b)),
        ),
        compiler_params=pltpu.CompilerParams(
            dimension_semantics=("parallel",)),   # shard batch steps over TCs (v7x)
    )(mask, x_l, w1_2d, b1_col, w2_2d, b2_col)

    # (Cout_p, B*HW) -> (B, Cout, H, W), dropping padded channels.
    out = out.reshape(Cout_p, B, H, W).transpose(1, 0, 2, 3)[:, :Cout]
    return out


def ref_double_conv(x_nchw, w1, b1, w2, b2):
    """Pure-JAX f32 reference (NHWC conv, HIGHEST precision) for correctness."""
    x = jnp.transpose(x_nchw, (0, 2, 3, 1))
    dn1 = lax.conv_dimension_numbers(x.shape, w1.shape, ("NHWC", "HWIO", "NHWC"))
    y = lax.conv_general_dilated(x, w1, (1, 1), "SAME", dimension_numbers=dn1,
                                 precision=lax.Precision.HIGHEST) + b1
    y = jnp.maximum(y, 0.0)
    dn2 = lax.conv_dimension_numbers(y.shape, w2.shape, ("NHWC", "HWIO", "NHWC"))
    y = lax.conv_general_dilated(y, w2, (1, 1), "SAME", dimension_numbers=dn2,
                                 precision=lax.Precision.HIGHEST) + b2
    return jnp.transpose(jnp.tanh(y), (0, 3, 1, 2))


if __name__ == "__main__":
    B, Cin, Cout, H, W = 2, 4, 8, 16, 16

    key = jax.random.PRNGKey(0)
    kx, k1, kb1, k2, kb2 = jax.random.split(key, 5)

    # PyTorch-style uniform init, bound 1/sqrt(fan_in).
    bound1 = 1.0 / (Cin * 9) ** 0.5
    bound2 = 1.0 / (Cout * 9) ** 0.5
    w1 = jax.random.uniform(k1, (3, 3, Cin, Cout), jnp.float32, -bound1, bound1)
    b1 = jax.random.uniform(kb1, (Cout,), jnp.float32, -bound1, bound1)
    w2 = jax.random.uniform(k2, (3, 3, Cout, Cout), jnp.float32, -bound2, bound2)
    b2 = jax.random.uniform(kb2, (Cout,), jnp.float32, -bound2, bound2)

    x = jax.random.normal(kx, (B, Cin, H, W), jnp.float32)

    out = jax.block_until_ready(double_conv(x, w1, b1, w2, b2))
    ref = ref_double_conv(x, w1, b1, w2, b2)

    assert out.shape == (B, Cout, H, W)
    # All-f32 pipeline: tolerance only needs to cover MXU f32 matmul rounding.
    assert jnp.allclose(out, ref, atol=5e-3, rtol=5e-3), "mismatch vs reference"

    print("KERNEL_OK")
</pallas_src>

<mosaic_0001>
module attributes {stable_mosaic.version = 11 : i64} {
  func.func @double_conv_kernel(%arg0: i32, %arg1: memref<8x256xf32, #tpu.memory_space<vmem>>, %arg2: memref<8x256xf32, #tpu.memory_space<vmem>>, %arg3: memref<8x72xf32, #tpu.memory_space<vmem>>, %arg4: memref<8x1xf32, #tpu.memory_space<vmem>>, %arg5: memref<8x72xf32, #tpu.memory_space<vmem>>, %arg6: memref<8x1xf32, #tpu.memory_space<vmem>>, %arg7: memref<8x256xf32, #tpu.memory_space<vmem>>) attributes {dimension_semantics = [#tpu.dimension_semantics<parallel>], iteration_bounds = array<i64: 2>, scalar_prefetch = 0 : i64, scratch_operands = 0 : i64, tpu.core_type = #tpu.core_type<tc>, window_params = [{pipeline_mode = #tpu.pipeline_mode<synchronous>, transform_indices = @transform_0, window_bounds = array<i64: 8, 256>}, {transform_indices = @transform_1, window_bounds = array<i64: 8, 256>}, {pipeline_mode = #tpu.pipeline_mode<synchronous>, transform_indices = @transform_2, window_bounds = array<i64: 8, 72>}, {pipeline_mode = #tpu.pipeline_mode<synchronous>, transform_indices = @transform_3, window_bounds = array<i64: 8, 1>}, {pipeline_mode = #tpu.pipeline_mode<synchronous>, transform_indices = @transform_4, window_bounds = array<i64: 8, 72>}, {pipeline_mode = #tpu.pipeline_mode<synchronous>, transform_indices = @transform_5, window_bounds = array<i64: 8, 1>}, {transform_indices = @transform_6, window_bounds = array<i64: 8, 256>}]} {
    %c0 = arith.constant 0 : index
    %c0_0 = arith.constant 0 : index
    %0 = vector.load %arg2[%c0, %c0_0] : memref<8x256xf32, #tpu.memory_space<vmem>>, vector<8x256xf32>
    %c17_i32 = arith.constant 17 : i32
    %1 = tpu.dynamic_rotate %0 by %c17_i32 dim 1 : vector<8x256xf32>, i32 -> vector<8x256xf32>
    %c0_1 = arith.constant 0 : index
    %c0_2 = arith.constant 0 : index
    %2 = vector.load %arg1[%c0_1, %c0_2] : memref<8x256xf32, #tpu.memory_space<vmem>>, vector<1x256xf32>
    %3 = vector.broadcast %2 : vector<1x256xf32> to vector<8x256xf32>
    %4 = arith.mulf %1, %3 : vector<8x256xf32>
    %c16_i32 = arith.constant 16 : i32
    %5 = tpu.dynamic_rotate %0 by %c16_i32 dim 1 : vector<8x256xf32>, i32 -> vector<8x256xf32>
    %c1 = arith.constant 1 : index
    %c0_3 = arith.constant 0 : index
    %6 = vector.load %arg1[%c1, %c0_3] : memref<8x256xf32, #tpu.memory_space<vmem>>, vector<1x256xf32>
    %7 = vector.broadcast %6 : vector<1x256xf32> to vector<8x256xf32>
    %8 = arith.mulf %5, %7 : vector<8x256xf32>
    %c15_i32 = arith.constant 15 : i32
    %9 = tpu.dynamic_rotate %0 by %c15_i32 dim 1 : vector<8x256xf32>, i32 -> vector<8x256xf32>
    %c2 = arith.constant 2 : index
    %c0_4 = arith.constant 0 : index
    %10 = vector.load %arg1[%c2, %c0_4] : memref<8x256xf32, #tpu.memory_space<vmem>>, vector<1x256xf32>
    %11 = vector.broadcast %10 : vector<1x256xf32> to vector<8x256xf32>
    %12 = arith.mulf %9, %11 : vector<8x256xf32>
    %c1_i32 = arith.constant 1 : i32
    %13 = tpu.dynamic_rotate %0 by %c1_i32 dim 1 : vector<8x256xf32>, i32 -> vector<8x256xf32>
    %c3 = arith.constant 3 : index
    %c0_5 = arith.constant 0 : index
    %14 = vector.load %arg1[%c3, %c0_5] : memref<8x256xf32, #tpu.memory_space<vmem>>, vector<1x256xf32>
    %15 = vector.broadcast %14 : vector<1x256xf32> to vector<8x256xf32>
    %16 = arith.mulf %13, %15 : vector<8x256xf32>
    %c255_i32 = arith.constant 255 : i32
    %17 = tpu.dynamic_rotate %0 by %c255_i32 dim 1 : vector<8x256xf32>, i32 -> vector<8x256xf32>
    %c4 = arith.constant 4 : index
    %c0_6 = arith.constant 0 : index
    %18 = vector.load %arg1[%c4, %c0_6] : memref<8x256xf32, #tpu.memory_space<vmem>>, vector<1x256xf32>
    %19 = vector.broadcast %18 : vector<1x256xf32> to vector<8x256xf32>
    %20 = arith.mulf %17, %19 : vector<8x256xf32>
    %c241_i32 = arith.constant 241 : i32
    %21 = tpu.dynamic_rotate %0 by %c241_i32 dim 1 : vector<8x256xf32>, i32 -> vector<8x256xf32>
    %c5 = arith.constant 5 : index
    %c0_7 = arith.constant 0 : index
    %22 = vector.load %arg1[%c5, %c0_7] : memref<8x256xf32, #tpu.memory_space<vmem>>, vector<1x256xf32>
    %23 = vector.broadcast %22 : vector<1x256xf32> to vector<8x256xf32>
    %24 = arith.mulf %21, %23 : vector<8x256xf32>
    %c240_i32 = arith.constant 240 : i32
    %25 = tpu.dynamic_rotate %0 by %c240_i32 dim 1 : vector<8x256xf32>, i32 -> vector<8x256xf32>
    %c6 = arith.constant 6 : index
    %c0_8 = arith.constant 0 : index
    %26 = vector.load %arg1[%c6, %c0_8] : memref<8x256xf32, #tpu.memory_space<vmem>>, vector<1x256xf32>
    %27 = vector.broadcast %26 : vector<1x256xf32> to vector<8x256xf32>
    %28 = arith.mulf %25, %27 : vector<8x256xf32>
    %c239_i32 = arith.constant 239 : i32
    %29 = tpu.dynamic_rotate %0 by %c239_i32 dim 1 : vector<8x256xf32>, i32 -> vector<8x256xf32>
    %c7 = arith.constant 7 : index
    %c0_9 = arith.constant 0 : index
    %30 = vector.load %arg1[%c7, %c0_9] : memref<8x256xf32, #tpu.memory_space<vmem>>, vector<1x256xf32>
    %31 = vector.broadcast %30 : vector<1x256xf32> to vector<8x256xf32>
    %32 = arith.mulf %29, %31 : vector<8x256xf32>
    %33 = tpu.concatenate %4, %8, %12, %16, %0, %20, %24, %28, %32 in 0 : vector<8x256xf32>, vector<8x256xf32>, vector<8x256xf32>, vector<8x256xf32>, vector<8x256xf32>, vector<8x256xf32>, vector<8x256xf32>, vector<8x256xf32>, vector<8x256xf32> -> vector<72x256xf32>
    %c0_10 = arith.constant 0 : index
    %c0_11 = arith.constant 0 : index
    %34 = vector.load %arg3[%c0_10, %c0_11] : memref<8x72xf32, #tpu.memory_space<vmem>>, vector<8x72xf32>
    %cst = arith.constant dense<0.000000e+00> : vector<8x256xf32>
    %35 = tpu.matmul %34, %33, %cst {dimension_numbers = #tpu.dot_dimension_numbers<[1], [0], [0], [1], [0, 0, 1, 1], [], []>} : vector<8x72xf32>, vector<72x256xf32>, vector<8x256xf32> -> vector<8x256xf32>
    %c0_12 = arith.constant 0 : index
    %c0_13 = arith.constant 0 : index
    %36 = vector.load %arg4[%c0_12, %c0_13] : memref<8x1xf32, #tpu.memory_space<vmem>>, vector<8x1xf32>
    %37 = vector.broadcast %36 : vector<8x1xf32> to vector<8x256xf32>
    %38 = arith.addf %35, %37 : vector<8x256xf32>
    %cst_14 = arith.constant 0.000000e+00 : f32
    %39 = vector.broadcast %cst_14 : f32 to vector<8x256xf32>
    %40 = arith.maximumf %38, %39 : vector<8x256xf32>
    %c17_i32_15 = arith.constant 17 : i32
    %41 = tpu.dynamic_rotate %40 by %c17_i32_15 dim 1 : vector<8x256xf32>, i32 -> vector<8x256xf32>
    %c0_16 = arith.constant 0 : index
    %c0_17 = arith.constant 0 : index
    %42 = vector.load %arg1[%c0_16, %c0_17] : memref<8x256xf32, #tpu.memory_space<vmem>>, vector<1x256xf32>
    %43 = vector.broadcast %42 : vector<1x256xf32> to vector<8x256xf32>
    %44 = arith.mulf %41, %43 : vector<8x256xf32>
    %c16_i32_18 = arith.constant 16 : i32
    %45 = tpu.dynamic_rotate %40 by %c16_i32_18 dim 1 : vector<8x256xf32>, i32 -> vector<8x256xf32>
    %c1_19 = arith.constant 1 : index
    %c0_20 = arith.constant 0 : index
    %46 = vector.load %arg1[%c1_19, %c0_20] : memref<8x256xf32, #tpu.memory_space<vmem>>, vector<1x256xf32>
    %47 = vector.broadcast %46 : vector<1x256xf32> to vector<8x256xf32>
    %48 = arith.mulf %45, %47 : vector<8x256xf32>
    %c15_i32_21 = arith.constant 15 : i32
    %49 = tpu.dynamic_rotate %40 by %c15_i32_21 dim 1 : vector<8x256xf32>, i32 -> vector<8x256xf32>
    %c2_22 = arith.constant 2 : index
    %c0_23 = arith.constant 0 : index
    %50 = vector.load %arg1[%c2_22, %c0_23] : memref<8x256xf32, #tpu.memory_space<vmem>>, vector<1x256xf32>
    %51 = vector.broadcast %50 : vector<1x256xf32> to vector<8x256xf32>
    %52 = arith.mulf %49, %51 : vector<8x256xf32>
    %c1_i32_24 = arith.constant 1 : i32
    %53 = tpu.dynamic_rotate %40 by %c1_i32_24 dim 1 : vector<8x256xf32>, i32 -> vector<8x256xf32>
    %c3_25 = arith.constant 3 : index
    %c0_26 = arith.constant 0 : index
    %54 = vector.load %arg1[%c3_25, %c0_26] : memref<8x256xf32, #tpu.memory_space<vmem>>, vector<1x256xf32>
    %55 = vector.broadcast %54 : vector<1x256xf32> to vector<8x256xf32>
    %56 = arith.mulf %53, %55 : vector<8x256xf32>
    %c255_i32_27 = arith.constant 255 : i32
    %57 = tpu.dynamic_rotate %40 by %c255_i32_27 dim 1 : vector<8x256xf32>, i32 -> vector<8x256xf32>
    %c4_28 = arith.constant 4 : index
    %c0_29 = arith.constant 0 : index
    %58 = vector.load %arg1[%c4_28, %c0_29] : memref<8x256xf32, #tpu.memory_space<vmem>>, vector<1x256xf32>
    %59 = vector.broadcast %58 : vector<1x256xf32> to vector<8x256xf32>
    %60 = arith.mulf %57, %59 : vector<8x256xf32>
    %c241_i32_30 = arith.constant 241 : i32
    %61 = tpu.dynamic_rotate %40 by %c241_i32_30 dim 1 : vector<8x256xf32>, i32 -> vector<8x256xf32>
    %c5_31 = arith.constant 5 : index
    %c0_32 = arith.constant 0 : index
    %62 = vector.load %arg1[%c5_31, %c0_32] : memref<8x256xf32, #tpu.memory_space<vmem>>, vector<1x256xf32>
    %63 = vector.broadcast %62 : vector<1x256xf32> to vector<8x256xf32>
    %64 = arith.mulf %61, %63 : vector<8x256xf32>
    %c240_i32_33 = arith.constant 240 : i32
    %65 = tpu.dynamic_rotate %40 by %c240_i32_33 dim 1 : vector<8x256xf32>, i32 -> vector<8x256xf32>
    %c6_34 = arith.constant 6 : index
    %c0_35 = arith.constant 0 : index
    %66 = vector.load %arg1[%c6_34, %c0_35] : memref<8x256xf32, #tpu.memory_space<vmem>>, vector<1x256xf32>
    %67 = vector.broadcast %66 : vector<1x256xf32> to vector<8x256xf32>
    %68 = arith.mulf %65, %67 : vector<8x256xf32>
    %c239_i32_36 = arith.constant 239 : i32
    %69 = tpu.dynamic_rotate %40 by %c239_i32_36 dim 1 : vector<8x256xf32>, i32 -> vector<8x256xf32>
    %c7_37 = arith.constant 7 : index
    %c0_38 = arith.constant 0 : index
    %70 = vector.load %arg1[%c7_37, %c0_38] : memref<8x256xf32, #tpu.memory_space<vmem>>, vector<1x256xf32>
    %71 = vector.broadcast %70 : vector<1x256xf32> to vector<8x256xf32>
    %72 = arith.mulf %69, %71 : vector<8x256xf32>
    %73 = tpu.concatenate %44, %48, %52, %56, %40, %60, %64, %68, %72 in 0 : vector<8x256xf32>, vector<8x256xf32>, vector<8x256xf32>, vector<8x256xf32>, vector<8x256xf32>, vector<8x256xf32>, vector<8x256xf32>, vector<8x256xf32>, vector<8x256xf32> -> vector<72x256xf32>
    %c0_39 = arith.constant 0 : index
    %c0_40 = arith.constant 0 : index
    %74 = vector.load %arg5[%c0_39, %c0_40] : memref<8x72xf32, #tpu.memory_space<vmem>>, vector<8x72xf32>
    %cst_41 = arith.constant dense<0.000000e+00> : vector<8x256xf32>
    %75 = tpu.matmul %74, %73, %cst_41 {dimension_numbers = #tpu.dot_dimension_numbers<[1], [0], [0], [1], [0, 0, 1, 1], [], []>} : vector<8x72xf32>, vector<72x256xf32>, vector<8x256xf32> -> vector<8x256xf32>
    %c0_42 = arith.constant 0 : index
    %c0_43 = arith.constant 0 : index
    %76 = vector.load %arg6[%c0_42, %c0_43] : memref<8x1xf32, #tpu.memory_space<vmem>>, vector<8x1xf32>
    %77 = vector.broadcast %76 : vector<8x1xf32> to vector<8x256xf32>
    %78 = arith.addf %75, %77 : vector<8x256xf32>
    %79 = math.tanh %78 : vector<8x256xf32>
    %c0_44 = arith.constant 0 : index
    %c0_45 = arith.constant 0 : index
    %80 = vector.load %arg7[%c0_44, %c0_45] : memref<8x256xf32, #tpu.memory_space<vmem>>, vector<8x256xf32>
    tpu.vector_store %arg7[%c0_44, %c0_45], %79 {strides = array<i32>} : memref<8x256xf32, #tpu.memory_space<vmem>>, vector<8x256xf32>,
    return
  }
  func.func @transform_0(%arg0: i32) -> (i32, i32) {
    %c0_i32 = arith.constant 0 : i32
    %c0_i32_0 = arith.constant 0 : i32
    %c0_i32_1 = arith.constant 0 : i32
    return %c0_i32, %c0_i32_0 : i32, i32
  }
  func.func @transform_1(%arg0: i32) -> (i32, i32) {
    %c0_i32 = arith.constant 0 : i32
    %c0_i32_0 = arith.constant 0 : i32
    return %c0_i32, %arg0 : i32, i32
  }
  func.func @transform_2(%arg0: i32) -> (i32, i32) {
    %c0_i32 = arith.constant 0 : i32
    %c0_i32_0 = arith.constant 0 : i32
    %c0_i32_1 = arith.constant 0 : i32
    return %c0_i32, %c0_i32_0 : i32, i32
  }
  func.func @transform_3(%arg0: i32) -> (i32, i32) {
    %c0_i32 = arith.constant 0 : i32
    %c0_i32_0 = arith.constant 0 : i32
    %c0_i32_1 = arith.constant 0 : i32
    return %c0_i32, %c0_i32_0 : i32, i32
  }
  func.func @transform_4(%arg0: i32) -> (i32, i32) {
    %c0_i32 = arith.constant 0 : i32
    %c0_i32_0 = arith.constant 0 : i32
    %c0_i32_1 = arith.constant 0 : i32
    return %c0_i32, %c0_i32_0 : i32, i32
  }
  func.func @transform_5(%arg0: i32) -> (i32, i32) {
    %c0_i32 = arith.constant 0 : i32
    %c0_i32_0 = arith.constant 0 : i32
    %c0_i32_1 = arith.constant 0 : i32
    return %c0_i32, %c0_i32_0 : i32, i32
  }
  func.func @transform_6(%arg0: i32) -> (i32, i32) {
    %c0_i32 = arith.constant 0 : i32
    %c0_i32_0 = arith.constant 0 : i32
    return %c0_i32, %arg0 : i32, i32
  }
}

</mosaic_0001>

<bundles_post_ra>
// kernel: double_conv.1
= control target key start
LH: loop header
LB: loop body
LE: loop exit
PB: predicated region body
PF: predicated region fallthrough
CT: control target
= control target key end

     0   :  { %s851_s21 = smov 0   ;;  %s1136_s0 = inlined_call_operand.vmem [shape: f32[8,256], index: 0, kind: input, shape index: {}]   ;;  %s1137_s1 = inlined_call_operand.vmem [shape: f32[8,512], index: 1, kind: input, shape index: {}]   ;;  %s1138_s2 = inlined_call_operand.vmem [shape: f32[8,72], index: 2, kind: input, shape index: {}]   ;;  %s1139_s3 = inlined_call_operand.vmem [shape: f32[8,1], index: 3, kind: input, shape index: {}]   ;;  %s1140_s4 = inlined_call_operand.vmem [shape: f32[8,72], index: 4, kind: input, shape index: {}]   ;;  %s1141_s5 = inlined_call_operand.vmem [shape: f32[8,1], index: 5, kind: input, shape index: {}]   ;;  %s1142_s6 = inlined_call_operand.vmem [shape: f32[8,512], index: 6, kind: output, shape index: {}]  }
   0x1 LB: > { %s723_s22 = sadd.s32 4294967295, %s804_s21   ;;  %p727_p0 = scmp.ge.s32.totalorder %s804_s21, 1  ;;  %s804_s21 = sphi %s851_s21, %s16_s21  }
   0x2   : > { %p213_p1 = scmp.lt.s32.totalorder %s804_s21, 3 }
   0x4   : > { %p214_p2 = pnand %p727_p0, %p213_p1 }
   0x5   : > { %s728_s23 = sshll.u32 (!%p214_p2), %s723_s22, 1  ;;  %s806_s28 = smov (!%p214_p2), 16   ;;  %v812_v2 = vmov (!%p214_p2), 0.0   ;;  %v813_v3 = vmov (!%p214_p2), 0   ;;  %v435_v4 = vld [vmem:[%s1139_s3] sm:$0xff] (!%p214_p2)  ;;  %v261_v5 = vlaneseq (!%p214_p2)  ;;  %vm441_vm8 = vcmask (!%p214_p2), 588800  }
   0x6   : > { %217 = sbr.rel (%p214_p2) target bundleno = 764 (0x2fc), region = 44  ;;  %p244_p3 = scmp.lt.s32.totalorder (!%p214_p2), %s728_s23, 3  ;;  %509 = vmatprep.mubr.f32.mxu0 (!%p214_p2), %v812_v2  ;;  %656 = vmatprep.mubr.f32.mxu1 (!%p214_p2), %v812_v2  ;;  %v732_v10 = vld [vmem:[%s1136_s0 + $0x1] ss:$8 sm:$0x3] (!%p214_p2) }
   0x7   : > { %s807_s29 = smov (!%p214_p2), 17   ;;  %s808_s30 = smov (!%p214_p2), 15   ;;  %793 = vset.pattern.permute.xlu0 (!%p214_p2), %v813_v3  ;;  %v269_v6 = vshrl.u32 (!%p214_p2), %v261_v5, 7  ;;  %v906_v7 = vand.u32 (!%p214_p2), 127, %v261_v5 }
   0x8   : > { %s809_s7 = smov (!%p214_p2), 1   ;;  %s810_s8 = smov (!%p214_p2), 127   ;;  %v266_v11 = vld [vmem:[%s1136_s0] ss:$8 sm:$0x3] (!%p214_p2) }
   0x9   : > { %s811_s9 = smov (!%p214_p2), 113   ;;  %s814_s10 = smov (!%p214_p2), 112   ;;  %v908_v8 = vsub.s32 (!%p214_p2), 0, %v269_v6  ;;  %v910_v9 = vsub.s32 (!%p214_p2), 1, %v269_v6  ;;  %vm284_vm0 = vcmp.lt.s32.totalorder (!%p214_p2), %v906_v7, 16  ;;  %vm263_vm1 = vcmp.lt.s32.totalorder (!%p214_p2), %v906_v7, 17 }
   0xa   : > { %s815_s11 = smov (!%p214_p2), 111   ;;  %v733_v26 = vld [vmem:[%s1136_s0 + $0x2] ss:$8 sm:$0x3] (!%p214_p2)  ;;  %vm306_vm2 = vcmp.lt.s32.totalorder (!%p214_p2), %v906_v7, 15  ;;  %vm328_vm3 = vcmp.lt.s32.totalorder (!%p214_p2), %v906_v7, 1 }
   0xb   : > { %v921_v14 = vrot.slane (!%p214_p2), %v732_v10, %v908_v8  ;;  %v924_v15 = vrot.slane (!%p214_p2), %v266_v11, %v908_v8  ;;  %v927_v16 = vrot.slane (!%p214_p2), %v266_v11, %v910_v9  ;;  %v930_v17 = vrot.slane (!%p214_p2), %v732_v10, %v910_v9  ;;  %v734_v29 = vld [vmem:[%s1136_s0 + $0x3] ss:$8 sm:$0x3] (!%p214_p2)  ;;  %v735_v38 = vld [vmem:[%s1136_s0 + $0x4] ss:$8 sm:$0x3] (!%p214_p2) }
   0xc   : > { %v952_v34 = vrot.slane (!%p214_p2), %v733_v26, %v908_v8  ;;  %v955_v35 = vrot.slane (!%p214_p2), %v733_v26, %v910_v9  ;;  %v959_v36 = vrot.slane (!%p214_p2), %v734_v29, %v908_v8  ;;  %v962_v37 = vrot.slane (!%p214_p2), %v734_v29, %v910_v9  ;;  %v736_v59 = vld [vmem:[%s1136_s0 + $0x5] ss:$8 sm:$0x3] (!%p214_p2)  ;;  %v737_v60 = vld [vmem:[%s1136_s0 + $0x6] ss:$8 sm:$0x3] (!%p214_p2) }
   0xd   : > { %s1144_s23 = smov (!%p244_p3, %s728_s23), 3  ;;  %vm350_vm4 = vcmp.lt.s32.totalorder %v906_v7, 127  ;;  %v977_v45 = vrot.slane %v735_v38, %v908_v8  ;;  %v980_v46 = vrot.slane %v735_v38, %v910_v9  ;;  %vm372_vm5 = vcmp.lt.s32.totalorder %v906_v7, 113 }
   0xe   : > { %s729_s24 = sshll.u32 %s1144_s23, 3  ;;  %v1002_v3 = vrot.slane %v736_v59, %v908_v8  ;;  %vm394_vm6 = vcmp.lt.s32.totalorder %v906_v7, 112  ;;  %v1009_v5 = vrot.slane %v737_v60, %v908_v8  ;;  %v1012_v6 = vrot.slane %v737_v60, %v910_v9 }
   0xf   : > { %s247_s27 = scalar_lea.vmem %s1137_s1, %s729_s24  ;;  %vm416_vm7 = vcmp.lt.s32.totalorder %v906_v7, 111 }
  0x10   : > { %v867_v0 = vld [vmem:[%s247_s27] sm:$0xff]  ;;  %v873_v1 = vld [vmem:[%s247_s27 + $0x8] sm:$0xff] }
  0x11   : > { %280 = vrot.lane.b32.xlu1 %v867_v0, %s806_s28  ;;  %257 = vrot.lane.b32.xlu0 %v867_v0, %s807_s29 }
  0x15   : > { %282 = vrot.lane.b32.xlu1 %v873_v1, %s806_s28  ;;  %259 = vrot.lane.b32.xlu0 %v873_v1, %s807_s29 }
  0x19   : > { %304 = vrot.lane.b32.xlu1 %v873_v1, %s808_s30  ;;  %302 = vrot.lane.b32.xlu0 %v867_v0, %s808_s30 }
  0x1d   : > { %326 = vrot.lane.b32.xlu1 %v873_v1, %s809_s7  ;;  %324 = vrot.lane.b32.xlu0 %v867_v0, %s809_s7 }
  0x21   : > { %348 = vrot.lane.b32.xlu1 %v873_v1, %s810_s8  ;;  %346 = vrot.lane.b32.xlu0 %v867_v0, %s810_s8 }
  0x25   : > { %370 = vrot.lane.b32.xlu1 %v873_v1, %s811_s9  ;;  %368 = vrot.lane.b32.xlu0 %v867_v0, %s811_s9 }
  0x29   : > { %392 = vrot.lane.b32.xlu1 %v873_v1, %s814_s10  ;;  %390 = vrot.lane.b32.xlu0 %v867_v0, %s814_s10 }
  0x2d   : > { %414 = vrot.lane.b32.xlu1 %v873_v1, %s815_s11  ;;  %412 = vrot.lane.b32.xlu0 %v867_v0, %s815_s11 }
  0x31   : > { %438 = vperm.xlu0 %793, %v435_v4   ;;  %v1005_v4 = vrot.slane %v736_v59, %v910_v9 }
  0x83   : > { %v281_v12 = vpop.permute.xlu1 %280  ;;  %v258_v13 = vpop.permute.xlu0 %257 }
  0x87   : > { %v283_v18 = vpop.permute.xlu1 %282  ;;  %v260_v19 = vpop.permute.xlu0 %259 }
  0x88   : > { %v285_v20 = vsel %vm284_vm0, %v281_v12, %v283_v18  ;;  %v286_v21 = vsel %vm284_vm0, %v283_v18, %v281_v12  ;;  %v264_v22 = vsel %vm263_vm1, %v258_v13, %v260_v19  ;;  %v265_v23 = vsel %vm263_vm1, %v260_v19, %v258_v13 }
  0x89   : > { %v300_v24 = vmul.f32 %v921_v14, %v286_v21  ;;  %v278_v25 = vmul.f32 %v924_v15, %v265_v23  ;;  %v279_v27 = vmul.f32 %v927_v16, %v264_v22  ;;  %v301_v28 = vmul.f32 %v930_v17, %v285_v20 }
  0x8b   : > { %v305_v30 = vpop.permute.xlu1 %304  ;;  %v303_v31 = vpop.permute.xlu0 %302  ;;  %v743_v32 = vpack.c.bf16 %v301_v28, %v279_v27  ;;  %v745_v33 = vpack.c.bf16 %v300_v24, %v278_v25 }
  0x8c   : > { %v307_v39 = vsel %vm306_vm2, %v303_v31, %v305_v30  ;;  %v308_v40 = vsel %vm306_vm2, %v305_v30, %v303_v31 }
  0x8d   : > { %744 = vmatprep.subr.bf16.mxu0 %v743_v32  ;;  %v322_v47 = vmul.f32 %v952_v34, %v308_v40  ;;  %v323_v48 = vmul.f32 %v955_v35, %v307_v39 }
  0x8e   : > { %746 = vmatpush1.bf16.msra.mxu0 %v745_v33 }
  0x8f   : > { %v327_v41 = vpop.permute.xlu1 %326  ;;  %v325_v42 = vpop.permute.xlu0 %324 }
  0x90   : > { %v329_v43 = vsel %vm328_vm3, %v325_v42, %v327_v41  ;;  %v330_v44 = vsel %vm328_vm3, %v327_v41, %v325_v42 }
  0x91   : > { %v344_v49 = vmul.f32 %v959_v36, %v330_v44  ;;  %v345_v50 = vmul.f32 %v962_v37, %v329_v43  ;;  %v583_v43 = vld [vmem:[%s1141_s5] sm:$0xff] }
  0x93   : > { %v349_v51 = vpop.permute.xlu1 %348  ;;  %v347_v52 = vpop.permute.xlu0 %346  ;;  %v747_v53 = vpack.c.bf16 %v345_v50, %v323_v48  ;;  %v749_v54 = vpack.c.bf16 %v344_v49, %v322_v47 }
  0x94   : > { %v351_v55 = vsel %vm350_vm4, %v347_v52, %v349_v51  ;;  %v352_v56 = vsel %vm350_vm4, %v349_v51, %v347_v52 }
  0x95   : > { %v366_v57 = vmul.f32 %v977_v45, %v351_v55  ;;  %v367_v58 = vmul.f32 %v980_v46, %v352_v56  ;;  %748 = vmatprep.subr.bf16.mxu0 %v747_v53 }
  0x96   : > { %750 = vmatpush1.bf16.msra.mxu0 %v749_v54 }
  0x97   : > { %v371_v61 = vpop.permute.xlu1 %370  ;;  %v369_v62 = vpop.permute.xlu0 %368  ;;  %v751_v63 = vpack.c.bf16 %v367_v58, %v873_v1  ;;  %v753_v2 = vpack.c.bf16 %v366_v57, %v867_v0  ;;  %v738_v1 = vld [vmem:[%s1136_s0 + $0x7] ss:$8 sm:$0x3] }
  0x98   : > { %v373_v0 = vsel %vm372_vm5, %v369_v62, %v371_v61  ;;  %v374_v10 = vsel %vm372_vm5, %v371_v61, %v369_v62  ;;  %v1027_v19 = vrot.slane %v738_v1, %v910_v9  ;;  %v1034_v24 = vrot.slane %v738_v1, %v908_v8  ;;  %v434_v8 = vld [vmem:[%s1138_s2] sm:$0xff] }
  0x99   : > { %752 = vmatprep.subr.bf16.mxu0 %v751_v63  ;;  %v388_v20 = vmul.f32 %v1002_v3, %v373_v0  ;;  %v389_v21 = vmul.f32 %v1005_v4, %v374_v10 }
  0x9a   : > { %754 = vmatpush1.bf16.msra.mxu0 %v753_v2 }
  0x9b   : > { %v393_v11 = vpop.permute.xlu1 %392  ;;  %v391_v12 = vpop.permute.xlu0 %390 }
  0x9c   : > { %v395_v13 = vsel %vm394_vm6, %v391_v12, %v393_v11  ;;  %v396_v18 = vsel %vm394_vm6, %v393_v11, %v391_v12 }
  0x9d   : > { %v410_v22 = vmul.f32 %v1009_v5, %v395_v13  ;;  %v411_v23 = vmul.f32 %v1012_v6, %v396_v18 }
  0x9f   : > { %v415_v25 = vpop.permute.xlu1 %414  ;;  %v755_v26 = vpack.c.bf16 %v411_v23, %v389_v21  ;;  %v413_v27 = vpop.permute.xlu0 %412  ;;  %v757_v28 = vpack.c.bf16 %v410_v22, %v388_v20 }
  0xa0   : > { %v417_v29 = vsel %vm416_vm7, %v413_v27, %v415_v25  ;;  %v418_v9 = vsel %vm416_vm7, %v415_v25, %v413_v27 }
  0xa1   : > { %756 = vmatprep.subr.bf16.mxu0 %v755_v26  ;;  %v433_v30 = vmul.f32 %v1027_v19, %v418_v9  ;;  %v432_v31 = vmul.f32 %v1034_v24, %v417_v29 }
  0xa2   : > { %758 = vmatpush1.bf16.msra.mxu0 %v757_v28 }
  0xa3   : > { %461 = vmatprep.subr.mxu0 %v433_v30 }
  0xa6   : > { %462 = vmatpush1.msra.mxu0 %v432_v31 }
  0xa7   : > { %739 = vmatmul.mubr.msk.f32.vlgmr.msra.gmra.mrb[0].mxu0 %vm441_vm8, %v434_v8 }
  0xb0   : > { %v439_v32 = vpop.permute.xlu0 %438 }
 0x17a   : > { %v511_v33 = vpop.f32.mrb[0].mxu0 }
 0x17b   : > { %v512_v38 = vadd.f32 %v511_v33, %v439_v32  ;;  %v513_v39 = vpop.f32.mrb[1].mxu0 }
 0x17c   : > { %v514_v41 = vadd.f32 %v513_v39, %v439_v32 }
 0x17d   : > { %v1046_v40 = vmax.f32 %v512_v38, 0.0 }
 0x17e   : > { %v517_v42 = vmax.f32 %v514_v41, 0.0 }
 0x17f   : > { %526 = vrot.lane.b32.xlu0 %v1046_v40, %s806_s28  ;;  %518 = vrot.lane.b32.xlu1 %v1046_v40, %s807_s29 }
 0x183   : > { %534 = vrot.lane.b32.xlu0 %v1046_v40, %s808_s30  ;;  %520 = vrot.lane.b32.xlu1 %v517_v42, %s807_s29 }
 0x187   : > { %542 = vrot.lane.b32.xlu0 %v1046_v40, %s809_s7  ;;  %528 = vrot.lane.b32.xlu1 %v517_v42, %s806_s28 }
 0x18b   : > { %550 = vrot.lane.b32.xlu0 %v1046_v40, %s810_s8  ;;  %536 = vrot.lane.b32.xlu1 %v517_v42, %s808_s30 }
 0x18f   : > { %558 = vrot.lane.b32.xlu0 %v1046_v40, %s811_s9  ;;  %544 = vrot.lane.b32.xlu1 %v517_v42, %s809_s7 }
 0x193   : > { %566 = vrot.lane.b32.xlu0 %v1046_v40, %s814_s10  ;;  %552 = vrot.lane.b32.xlu1 %v517_v42, %s810_s8 }
 0x197   : > { %574 = vrot.lane.b32.xlu0 %v1046_v40, %s815_s11  ;;  %560 = vrot.lane.b32.xlu1 %v517_v42, %s811_s9 }
 0x19b   : > { %586 = vperm.xlu0 %793, %v583_v43   ;;  %568 = vrot.lane.b32.xlu1 %v517_v42, %s814_s10  ;;  %s253_s10 = scalar_lea.vmem %s1142_s6, %s729_s24 }
 0x19f   : > { %576 = vrot.lane.b32.xlu1 %v517_v42, %s815_s11 }
 0x1f1   : > { %v527_v44 = vpop.permute.xlu0 %526  ;;  %v519_v47 = vpop.permute.xlu1 %518 }
 0x1f5   : > { %v535_v48 = vpop.permute.xlu0 %534  ;;  %v521_v49 = vpop.permute.xlu1 %520 }
 0x1f6   : > { %v522_v50 = vsel %vm263_vm1, %v519_v47, %v521_v49  ;;  %v523_v51 = vsel %vm263_vm1, %v521_v49, %v519_v47 }
 0x1f7   : > { %v524_v56 = vmul.f32 %v523_v51, %v924_v15  ;;  %v525_v58 = vmul.f32 %v522_v50, %v927_v16 }
 0x1f9   : > { %v543_v52 = vpop.permute.xlu0 %542  ;;  %v529_v53 = vpop.permute.xlu1 %528 }
 0x1fa   : > { %v530_v54 = vsel %vm284_vm0, %v527_v44, %v529_v53  ;;  %v531_v55 = vsel %vm284_vm0, %v529_v53, %v527_v44 }
 0x1fb   : > { %v532_v57 = vmul.f32 %v531_v55, %v921_v14  ;;  %v533_v59 = vmul.f32 %v530_v54, %v930_v17 }
 0x1fd   : > { %v537_v60 = vpop.permute.xlu1 %536  ;;  %v759_v61 = vpack.c.bf16 %v533_v59, %v525_v58  ;;  %v761_v62 = vpack.c.bf16 %v532_v57, %v524_v56  ;;  %v551_v63 = vpop.permute.xlu0 %550 }
 0x1fe   : > { %v538_v2 = vsel %vm306_vm2, %v535_v48, %v537_v60  ;;  %v539_v1 = vsel %vm306_vm2, %v537_v60, %v535_v48 }
 0x1ff   : > { %760 = vmatprep.subr.bf16.mxu1 %v759_v61  ;;  %v540_v16 = vmul.f32 %v539_v1, %v952_v34  ;;  %v541_v17 = vmul.f32 %v538_v2, %v955_v35 }
 0x200   : > { %762 = vmatpush1.bf16.msra.mxu1 %v761_v62 }
 0x201   : > { %v545_v0 = vpop.permute.xlu1 %544  ;;  %v559_v12 = vpop.permute.xlu0 %558 }
 0x202   : > { %v546_v14 = vsel %vm328_vm3, %v543_v52, %v545_v0  ;;  %v547_v15 = vsel %vm328_vm3, %v545_v0, %v543_v52 }
 0x203   : > { %v548_v10 = vmul.f32 %v547_v15, %v959_v36  ;;  %v549_v11 = vmul.f32 %v546_v14, %v962_v37 }
 0x205   : > { %v553_v13 = vpop.permute.xlu1 %552  ;;  %v763_v18 = vpack.c.bf16 %v549_v11, %v541_v17  ;;  %v765_v20 = vpack.c.bf16 %v548_v10, %v540_v16  ;;  %v567_v25 = vpop.permute.xlu0 %566 }
 0x206   : > { %v554_v21 = vsel %vm350_vm4, %v551_v63, %v553_v13  ;;  %v555_v22 = vsel %vm350_vm4, %v553_v13, %v551_v63 }
 0x207   : > { %v556_v23 = vmul.f32 %v554_v21, %v977_v45  ;;  %v557_v34 = vmul.f32 %v555_v22, %v980_v46  ;;  %764 = vmatprep.subr.bf16.mxu1 %v763_v18 }
 0x208   : > { %766 = vmatpush1.bf16.msra.mxu1 %v765_v20 }
 0x209   : > { %v561_v35 = vpop.permute.xlu1 %560  ;;  %v767_v36 = vpack.c.bf16 %v557_v34, %v517_v42  ;;  %v769_v37 = vpack.c.bf16 %v556_v23, %v1046_v40  ;;  %v575_v8 = vpop.permute.xlu0 %574 }
 0x20a   : > { %v562_v26 = vsel %vm372_vm5, %v559_v12, %v561_v35  ;;  %v563_v27 = vsel %vm372_vm5, %v561_v35, %v559_v12 }
 0x20b   : > { %768 = vmatprep.subr.bf16.mxu1 %v767_v36  ;;  %v564_v29 = vmul.f32 %v562_v26, %v1002_v3  ;;  %v565_v9 = vmul.f32 %v563_v27, %v1005_v4  ;;  %v582_v4 = vld [vmem:[%s1140_s4] sm:$0xff] }
 0x20c   : > { %770 = vmatpush1.bf16.msra.mxu1 %v769_v37 }
 0x20d   : > { %v569_v28 = vpop.permute.xlu1 %568 }
 0x20e   : > { %v570_v45 = vsel %vm394_vm6, %v567_v25, %v569_v28  ;;  %v571_v46 = vsel %vm394_vm6, %v569_v28, %v567_v25 }
 0x20f   : > { %v572_v30 = vmul.f32 %v570_v45, %v1009_v5  ;;  %v573_v31 = vmul.f32 %v571_v46, %v1012_v6 }
 0x211   : > { %v577_v32 = vpop.permute.xlu1 %576  ;;  %v771_v33 = vpack.c.bf16 %v573_v31, %v565_v9  ;;  %v773_v38 = vpack.c.bf16 %v572_v30, %v564_v29 }
 0x212   : > { %v579_v39 = vsel %vm416_vm7, %v577_v32, %v575_v8  ;;  %v578_v40 = vsel %vm416_vm7, %v575_v8, %v577_v32 }
 0x213   : > { %v581_v41 = vmul.f32 %v579_v39, %v1027_v19  ;;  %772 = vmatprep.subr.bf16.mxu1 %v771_v33  ;;  %v580_v3 = vmul.f32 %v578_v40, %v1034_v24 }
 0x214   : > { %774 = vmatpush1.bf16.msra.mxu1 %v773_v38 }
 0x215   : > { %608 = vmatprep.subr.mxu1 %v581_v41 }
 0x218   : > { %609 = vmatpush1.msra.mxu1 %v580_v3 }
 0x219   : > { %740 = vmatmul.mubr.msk.f32.vlgmr.msra.gmra.mrb[0].mxu1 %vm441_vm8, %v582_v4 }
 0x21a   : > { %v587_v5 = vpop.permute.xlu0 %586 }
 0x2ec   : > { %v658_v6 = vpop.f32.mrb[0].mxu1 }
 0x2ed   : > { %v659_v42 = vadd.f32 %v658_v6, %v587_v5  ;;  %v660_v7 = vpop.f32.mrb[1].mxu1 }
 0x2ee   : > { %v661_v43 = vadd.f32 %v660_v7, %v587_v5 }
 0x2ef   : > { %794 = vtanh.f32 %v659_v42 }
 0x2f0   : > { %796 = vtanh.f32 %v661_v43 }
 0x2f9   : > { %v795_v19 = vpop.eup %794 }
 0x2fa   : > { %v797_v24 = vpop.eup %796  ;;  %665 = vst [vmem:[%s253_s10] sm:$0xff] %v795_v19 }
 0x2fb   : > { %666 = vst [vmem:[%s253_s10 + $0x8] sm:$0xff] %v797_v24 }
 0x2fc PF: > { %s16_s21 = sadd.s32 1, %s804_s21  }
 0x2fd   : > { %p13_p4 = scmp.ge.s32.totalorder %s16_s21, 4  }
 0x2ff   :  { %15 = sbr.rel (!%p13_p4) target bundleno = 1 (0x1), region = 81 }

</bundles_post_ra>
